<compile_context>
chip_gen: v5e
topology: v5e:2x2
jax: 0.10.0
libtpu: 0.0.40
codegen_flags: <defaults>
</compile_context>

<pallas_src>
import functools

import jax
import jax.numpy as jnp
from jax.experimental import pallas as pl
from jax.experimental.pallas import tpu as pltpu


# ------------------------------ fused kernel -------------------------------

def _fused_forward_kernel(x_ref, w1_ref, b1_ref, w2_ref, b2_ref,
                          wf1_ref, bf1_ref, wf2_ref, bf2_ref,
                          o_ref, xpad_sc, y1pad_sc):
    """Entire TimeSeriesCNN forward, VMEM-resident.

    x_ref:    (B, S, Cin)   input, channel-last
    w1_ref:   (3, Cin, C1)  conv1 weights, tap-major  (w1[k,i,o] = torch_w1[o,i,k])
    b1_ref:   (1, C1)
    w2_ref:   (3, C1, C2)
    b2_ref:   (1, C2)
    wf1_ref:  (C2, F1)      fc1 weight (in, out)
    bf1_ref:  (1, F1)
    wf2_ref:  (F1, NC)
    bf2_ref:  (1, NC)
    o_ref:    (B, NC)       output logits
    xpad_sc:  (B, S+2, Cin) scratch, zero-padded input
    y1pad_sc: (B, S+2, C1)  scratch, zero-padded relu(conv1)
    """
    B, S, Cin = x_ref.shape

    # Zero the "same"-padding halos, then drop the input into the middle rows.
    xpad_sc[...] = jnp.zeros_like(xpad_sc)
    y1pad_sc[...] = jnp.zeros_like(y1pad_sc)
    xpad_sc[:, 1:S + 1, :] = x_ref[...]

    for b in range(B):  # B is tiny & static -> fully unrolled
        # ---- conv1 (k=3, pad=1) as 3 shifted matmuls, + bias + relu ----
        a1 = jnp.dot(xpad_sc[b, 0:S, :], w1_ref[0],
                     preferred_element_type=jnp.float32)
        a1 = a1 + jnp.dot(xpad_sc[b, 1:S + 1, :], w1_ref[1],
                          preferred_element_type=jnp.float32)
        a1 = a1 + jnp.dot(xpad_sc[b, 2:S + 2, :], w1_ref[2],
                          preferred_element_type=jnp.float32)
        y1pad_sc[b, 1:S + 1, :] = jnp.maximum(a1 + b1_ref[...], 0.0)

        # ---- conv2 (k=3, pad=1) + bias + relu ----
        a2 = jnp.dot(y1pad_sc[b, 0:S, :], w2_ref[0],
                     preferred_element_type=jnp.float32)
        a2 = a2 + jnp.dot(y1pad_sc[b, 1:S + 1, :], w2_ref[1],
                          preferred_element_type=jnp.float32)
        a2 = a2 + jnp.dot(y1pad_sc[b, 2:S + 2, :], w2_ref[2],
                          preferred_element_type=jnp.float32)
        y2 = jnp.maximum(a2 + b2_ref[...], 0.0)            # (S, C2)

        # ---- global average pool over time ----
        pooled = jnp.mean(y2, axis=0, keepdims=True)        # (1, C2)

        # ---- fc1 + relu ----
        h = jnp.maximum(
            jnp.dot(pooled, wf1_ref[...], preferred_element_type=jnp.float32)
            + bf1_ref[...], 0.0)                            # (1, F1)

        # TODO(synk): dropout(p=0.3) omitted — inference/eval-mode identity.

        # ---- fc2 (logits) ----
        logits = (jnp.dot(h, wf2_ref[...], preferred_element_type=jnp.float32)
                  + bf2_ref[...])                           # (1, NC)
        o_ref[b:b + 1, :] = logits.astype(o_ref.dtype)


def _fused_pallas_forward(x_bsc, lp):
    """x_bsc: (B, S, Cin) channel-last f32; lp: pre-laid-out params."""
    B, S, Cin = x_bsc.shape
    C1 = lp["w1"].shape[2]
    C2 = lp["w2"].shape[2]
    F1 = lp["wf1"].shape[1]
    NC = lp["wf2"].shape[1]

    flops = int(2 * B * S * 3 * (Cin * C1 + C1 * C2)
                + 2 * B * (C2 * F1 + F1 * NC))
    bytes_accessed = int(4 * (x_bsc.size + sum(int(v.size) for v in lp.values())
                              + B * NC))

    return pl.pallas_call(
        _fused_forward_kernel,
        out_shape=jax.ShapeDtypeStruct((B, NC), jnp.float32),
        scratch_shapes=[
            pltpu.VMEM((B, S + 2, Cin), jnp.float32),
            pltpu.VMEM((B, S + 2, C1), jnp.float32),
        ],
        compiler_params=pltpu.CompilerParams(
            vmem_limit_bytes=32 * 1024 * 1024),
        cost_estimate=pl.CostEstimate(flops=flops, transcendentals=0,
                                      bytes_accessed=bytes_accessed),
    )(x_bsc, lp["w1"], lp["b1"], lp["w2"], lp["b2"],
      lp["wf1"], lp["bf1"], lp["wf2"], lp["bf2"])


# ------------------------------- glue (JAX) --------------------------------

def timeseries_cnn_forward(x, layout_params, input_dim):
    """Mirrors TimeSeriesCNN.forward input handling, then one fused kernel."""
    if x.ndim == 2:                                  # tabular: (B, feat) -> (B, C, 1)
        x = x.reshape(x.shape[0], input_dim, 1)
    elif x.shape[1] != input_dim:                    # (B, S, C) -> (B, C, S)
        x = jnp.transpose(x, (0, 2, 1))
    # kernel wants channel-last (B, S, C)
    x_bsc = jnp.transpose(x, (0, 2, 1)).astype(jnp.float32)
    return _fused_pallas_forward(x_bsc, layout_params)


def init_torch_params(key, input_dim=8, num_classes=2):
    """Parameters in PyTorch's native layouts."""
    ks = jax.random.split(key, 8)

    def u(k, shape, fan_in):
        bound = 1.0 / jnp.sqrt(jnp.float32(fan_in))
        return jax.random.uniform(k, shape, jnp.float32, -bound, bound)

    return {
        "conv1_w": u(ks[0], (32, input_dim, 3), input_dim * 3),
        "conv1_b": u(ks[1], (32,), input_dim * 3),
        "conv2_w": u(ks[2], (64, 32, 3), 32 * 3),
        "conv2_b": u(ks[3], (64,), 32 * 3),
        "fc1_w": u(ks[4], (32, 64), 64),     # torch Linear: (out, in)
        "fc1_b": u(ks[5], (32,), 64),
        "fc2_w": u(ks[6], (num_classes, 32), 32),
        "fc2_b": u(ks[7], (num_classes,), 32),
    }


def to_kernel_layout(p):
    """Hoisted once at init: weight layouts the fused kernel consumes."""
    return {
        "w1": jnp.transpose(p["conv1_w"], (2, 1, 0)),   # (3, Cin, 32)
        "b1": p["conv1_b"].reshape(1, -1),
        "w2": jnp.transpose(p["conv2_w"], (2, 1, 0)),   # (3, 32, 64)
        "b2": p["conv2_b"].reshape(1, -1),
        "wf1": p["fc1_w"].T,                            # (64, 32)
        "bf1": p["fc1_b"].reshape(1, -1),
        "wf2": p["fc2_w"].T,                            # (32, NC)
        "bf2": p["fc2_b"].reshape(1, -1),
    }


def reference_forward(x, p, input_dim):
    """Pure-JAX reference (no Pallas) for a correctness sanity check."""
    if x.ndim == 2:
        x = x.reshape(x.shape[0], input_dim, 1)
    elif x.shape[1] != input_dim:
        x = jnp.transpose(x, (0, 2, 1))
    x = x.astype(jnp.float32)
    y = jax.lax.conv_general_dilated(
        x, p["conv1_w"], window_strides=(1,), padding=((1, 1),),
        dimension_numbers=("NCH", "OIH", "NCH"))
    y = jax.nn.relu(y + p["conv1_b"][None, :, None])
    y = jax.lax.conv_general_dilated(
        y, p["conv2_w"], window_strides=(1,), padding=((1, 1),),
        dimension_numbers=("NCH", "OIH", "NCH"))
    y = jax.nn.relu(y + p["conv2_b"][None, :, None])
    pooled = jnp.mean(y, axis=2)                        # (B, 64)
    h = jax.nn.relu(pooled @ p["fc1_w"].T + p["fc1_b"])
    return h @ p["fc2_w"].T + p["fc2_b"]


if __name__ == "__main__":
    key = jax.random.PRNGKey(0)
    kx, kp = jax.random.split(key)

    B, S, D, NC = 2, 16, 8, 2          # batch, seq_length, input_dim, classes
    x = jax.random.normal(kx, (B, S, D), jnp.float32)   # (batch, seq, features)

    torch_params = init_torch_params(kp, input_dim=D, num_classes=NC)
    kernel_params = to_kernel_layout(torch_params)      # hoisted layout work

    fwd = jax.jit(functools.partial(timeseries_cnn_forward, input_dim=D))
    out = fwd(x, kernel_params)
    out = jax.block_until_ready(out)

    ref = reference_forward(x, torch_params, D)
    assert out.shape == (B, NC), out.shape
    assert bool(jnp.all(jnp.isfinite(out)))
    assert bool(jnp.allclose(out, ref, rtol=3e-2, atol=3e-2)), (out, ref)

    print("KERNEL_OK")
</pallas_src>

<mosaic_0001>
module attributes {stable_mosaic.version = 11 : i64} {
  func.func @_fused_forward_kernel(%arg0: memref<2x16x8xf32, #tpu.memory_space<vmem>>, %arg1: memref<3x8x32xf32, #tpu.memory_space<vmem>>, %arg2: memref<1x32xf32, #tpu.memory_space<vmem>>, %arg3: memref<3x32x64xf32, #tpu.memory_space<vmem>>, %arg4: memref<1x64xf32, #tpu.memory_space<vmem>>, %arg5: memref<64x32xf32, #tpu.memory_space<vmem>>, %arg6: memref<1x32xf32, #tpu.memory_space<vmem>>, %arg7: memref<32x2xf32, #tpu.memory_space<vmem>>, %arg8: memref<1x2xf32, #tpu.memory_space<vmem>>, %arg9: memref<2x2xf32, #tpu.memory_space<vmem>>, %arg10: memref<2x18x8xf32, #tpu.memory_space<vmem>>, %arg11: memref<2x18x32xf32, #tpu.memory_space<vmem>>) attributes {dimension_semantics = [], scalar_prefetch = 0 : i64, scratch_operands = 2 : i64, tpu.core_type = #tpu.core_type<tc>} {
    %cst = arith.constant 0.000000e+00 : f32
    %0 = vector.broadcast %cst : f32 to vector<2x18x8xf32>
    %c0 = arith.constant 0 : index
    %c0_0 = arith.constant 0 : index
    %c0_1 = arith.constant 0 : index
    %1 = vector.load %arg10[%c0, %c0_0, %c0_1] : memref<2x18x8xf32, #tpu.memory_space<vmem>>, vector<2x18x8xf32>
    tpu.vector_store %arg10[%c0, %c0_0, %c0_1], %0 {strides = array<i32>} : memref<2x18x8xf32, #tpu.memory_space<vmem>>, vector<2x18x8xf32>,
    %cst_2 = arith.constant 0.000000e+00 : f32
    %2 = vector.broadcast %cst_2 : f32 to vector<2x18x32xf32>
    %c0_3 = arith.constant 0 : index
    %c0_4 = arith.constant 0 : index
    %c0_5 = arith.constant 0 : index
    %3 = vector.load %arg11[%c0_3, %c0_4, %c0_5] : memref<2x18x32xf32, #tpu.memory_space<vmem>>, vector<2x18x32xf32>
    tpu.vector_store %arg11[%c0_3, %c0_4, %c0_5], %2 {strides = array<i32>} : memref<2x18x32xf32, #tpu.memory_space<vmem>>, vector<2x18x32xf32>,
    %c0_6 = arith.constant 0 : index
    %c0_7 = arith.constant 0 : index
    %c0_8 = arith.constant 0 : index
    %4 = vector.load %arg0[%c0_6, %c0_7, %c0_8] : memref<2x16x8xf32, #tpu.memory_space<vmem>>, vector<2x16x8xf32>
    %c0_9 = arith.constant 0 : index
    %c1 = arith.constant 1 : index
    %c0_10 = arith.constant 0 : index
    %5 = vector.load %arg10[%c0_9, %c1, %c0_10] : memref<2x18x8xf32, #tpu.memory_space<vmem>>, vector<2x16x8xf32>
    tpu.vector_store %arg10[%c0_9, %c1, %c0_10], %4 {strides = array<i32>} : memref<2x18x8xf32, #tpu.memory_space<vmem>>, vector<2x16x8xf32>,
    %c0_11 = arith.constant 0 : index
    %c0_12 = arith.constant 0 : index
    %c0_13 = arith.constant 0 : index
    %6 = vector.load %arg10[%c0_11, %c0_12, %c0_13] : memref<2x18x8xf32, #tpu.memory_space<vmem>>, vector<1x16x8xf32>
    %7 = vector.shape_cast %6 : vector<1x16x8xf32> to vector<16x8xf32>
    %c0_14 = arith.constant 0 : index
    %c0_15 = arith.constant 0 : index
    %c0_16 = arith.constant 0 : index
    %8 = vector.load %arg1[%c0_14, %c0_15, %c0_16] : memref<3x8x32xf32, #tpu.memory_space<vmem>>, vector<1x8x32xf32>
    %9 = vector.shape_cast %8 : vector<1x8x32xf32> to vector<8x32xf32>
    %cst_17 = arith.constant dense<0.000000e+00> : vector<16x32xf32>
    %10 = tpu.matmul %7, %9, %cst_17 {dimension_numbers = #tpu.dot_dimension_numbers<[1], [0], [0], [1], [0, 0, 1, 1], [], []>} : vector<16x8xf32>, vector<8x32xf32>, vector<16x32xf32> -> vector<16x32xf32>
    %c0_18 = arith.constant 0 : index
    %c1_19 = arith.constant 1 : index
    %c0_20 = arith.constant 0 : index
    %11 = vector.load %arg10[%c0_18, %c1_19, %c0_20] : memref<2x18x8xf32, #tpu.memory_space<vmem>>, vector<1x16x8xf32>
    %12 = vector.shape_cast %11 : vector<1x16x8xf32> to vector<16x8xf32>
    %c1_21 = arith.constant 1 : index
    %c0_22 = arith.constant 0 : index
    %c0_23 = arith.constant 0 : index
    %13 = vector.load %arg1[%c1_21, %c0_22, %c0_23] : memref<3x8x32xf32, #tpu.memory_space<vmem>>, vector<1x8x32xf32>
    %14 = vector.shape_cast %13 : vector<1x8x32xf32> to vector<8x32xf32>
    %cst_24 = arith.constant dense<0.000000e+00> : vector<16x32xf32>
    %15 = tpu.matmul %12, %14, %cst_24 {dimension_numbers = #tpu.dot_dimension_numbers<[1], [0], [0], [1], [0, 0, 1, 1], [], []>} : vector<16x8xf32>, vector<8x32xf32>, vector<16x32xf32> -> vector<16x32xf32>
    %16 = arith.addf %10, %15 : vector<16x32xf32>
    %c0_25 = arith.constant 0 : index
    %c2 = arith.constant 2 : index
    %c0_26 = arith.constant 0 : index
    %17 = vector.load %arg10[%c0_25, %c2, %c0_26] : memref<2x18x8xf32, #tpu.memory_space<vmem>>, vector<1x16x8xf32>
    %18 = vector.shape_cast %17 : vector<1x16x8xf32> to vector<16x8xf32>
    %c2_27 = arith.constant 2 : index
    %c0_28 = arith.constant 0 : index
    %c0_29 = arith.constant 0 : index
    %19 = vector.load %arg1[%c2_27, %c0_28, %c0_29] : memref<3x8x32xf32, #tpu.memory_space<vmem>>, vector<1x8x32xf32>
    %20 = vector.shape_cast %19 : vector<1x8x32xf32> to vector<8x32xf32>
    %cst_30 = arith.constant dense<0.000000e+00> : vector<16x32xf32>
    %21 = tpu.matmul %18, %20, %cst_30 {dimension_numbers = #tpu.dot_dimension_numbers<[1], [0], [0], [1], [0, 0, 1, 1], [], []>} : vector<16x8xf32>, vector<8x32xf32>, vector<16x32xf32> -> vector<16x32xf32>
    %22 = arith.addf %16, %21 : vector<16x32xf32>
    %c0_31 = arith.constant 0 : index
    %c0_32 = arith.constant 0 : index
    %23 = vector.load %arg2[%c0_31, %c0_32] : memref<1x32xf32, #tpu.memory_space<vmem>>, vector<1x32xf32>
    %24 = vector.broadcast %23 : vector<1x32xf32> to vector<16x32xf32>
    %25 = arith.addf %22, %24 : vector<16x32xf32>
    %cst_33 = arith.constant 0.000000e+00 : f32
    %26 = vector.broadcast %cst_33 : f32 to vector<16x32xf32>
    %27 = arith.maximumf %25, %26 : vector<16x32xf32>
    %c0_34 = arith.constant 0 : index
    %c1_35 = arith.constant 1 : index
    %c0_36 = arith.constant 0 : index
    %28 = vector.load %arg11[%c0_34, %c1_35, %c0_36] : memref<2x18x32xf32, #tpu.memory_space<vmem>>, vector<1x16x32xf32>
    %29 = vector.shape_cast %28 : vector<1x16x32xf32> to vector<16x32xf32>
    %30 = vector.shape_cast %27 : vector<16x32xf32> to vector<1x16x32xf32>
    tpu.vector_store %arg11[%c0_34, %c1_35, %c0_36], %30 {strides = array<i32>} : memref<2x18x32xf32, #tpu.memory_space<vmem>>, vector<1x16x32xf32>,
    %c0_37 = arith.constant 0 : index
    %c0_38 = arith.constant 0 : index
    %c0_39 = arith.constant 0 : index
    %31 = vector.load %arg11[%c0_37, %c0_38, %c0_39] : memref<2x18x32xf32, #tpu.memory_space<vmem>>, vector<1x16x32xf32>
    %32 = vector.shape_cast %31 : vector<1x16x32xf32> to vector<16x32xf32>
    %c0_40 = arith.constant 0 : index
    %c0_41 = arith.constant 0 : index
    %c0_42 = arith.constant 0 : index
    %33 = vector.load %arg3[%c0_40, %c0_41, %c0_42] : memref<3x32x64xf32, #tpu.memory_space<vmem>>, vector<1x32x64xf32>
    %34 = vector.shape_cast %33 : vector<1x32x64xf32> to vector<32x64xf32>
    %cst_43 = arith.constant dense<0.000000e+00> : vector<16x64xf32>
    %35 = tpu.matmul %32, %34, %cst_43 {dimension_numbers = #tpu.dot_dimension_numbers<[1], [0], [0], [1], [0, 0, 1, 1], [], []>} : vector<16x32xf32>, vector<32x64xf32>, vector<16x64xf32> -> vector<16x64xf32>
    %c0_44 = arith.constant 0 : index
    %c1_45 = arith.constant 1 : index
    %c0_46 = arith.constant 0 : index
    %36 = vector.load %arg11[%c0_44, %c1_45, %c0_46] : memref<2x18x32xf32, #tpu.memory_space<vmem>>, vector<1x16x32xf32>
    %37 = vector.shape_cast %36 : vector<1x16x32xf32> to vector<16x32xf32>
    %c1_47 = arith.constant 1 : index
    %c0_48 = arith.constant 0 : index
    %c0_49 = arith.constant 0 : index
    %38 = vector.load %arg3[%c1_47, %c0_48, %c0_49] : memref<3x32x64xf32, #tpu.memory_space<vmem>>, vector<1x32x64xf32>
    %39 = vector.shape_cast %38 : vector<1x32x64xf32> to vector<32x64xf32>
    %cst_50 = arith.constant dense<0.000000e+00> : vector<16x64xf32>
    %40 = tpu.matmul %37, %39, %cst_50 {dimension_numbers = #tpu.dot_dimension_numbers<[1], [0], [0], [1], [0, 0, 1, 1], [], []>} : vector<16x32xf32>, vector<32x64xf32>, vector<16x64xf32> -> vector<16x64xf32>
    %41 = arith.addf %35, %40 : vector<16x64xf32>
    %c0_51 = arith.constant 0 : index
    %c2_52 = arith.constant 2 : index
    %c0_53 = arith.constant 0 : index
    %42 = vector.load %arg11[%c0_51, %c2_52, %c0_53] : memref<2x18x32xf32, #tpu.memory_space<vmem>>, vector<1x16x32xf32>
    %43 = vector.shape_cast %42 : vector<1x16x32xf32> to vector<16x32xf32>
    %c2_54 = arith.constant 2 : index
    %c0_55 = arith.constant 0 : index
    %c0_56 = arith.constant 0 : index
    %44 = vector.load %arg3[%c2_54, %c0_55, %c0_56] : memref<3x32x64xf32, #tpu.memory_space<vmem>>, vector<1x32x64xf32>
    %45 = vector.shape_cast %44 : vector<1x32x64xf32> to vector<32x64xf32>
    %cst_57 = arith.constant dense<0.000000e+00> : vector<16x64xf32>
    %46 = tpu.matmul %43, %45, %cst_57 {dimension_numbers = #tpu.dot_dimension_numbers<[1], [0], [0], [1], [0, 0, 1, 1], [], []>} : vector<16x32xf32>, vector<32x64xf32>, vector<16x64xf32> -> vector<16x64xf32>
    %47 = arith.addf %41, %46 : vector<16x64xf32>
    %c0_58 = arith.constant 0 : index
    %c0_59 = arith.constant 0 : index
    %48 = vector.load %arg4[%c0_58, %c0_59] : memref<1x64xf32, #tpu.memory_space<vmem>>, vector<1x64xf32>
    %49 = vector.broadcast %48 : vector<1x64xf32> to vector<16x64xf32>
    %50 = arith.addf %47, %49 : vector<16x64xf32>
    %cst_60 = arith.constant 0.000000e+00 : f32
    %51 = vector.broadcast %cst_60 : f32 to vector<16x64xf32>
    %52 = arith.maximumf %50, %51 : vector<16x64xf32>
    %cst_61 = arith.constant dense<0.000000e+00> : vector<64xf32>
    %53 = vector.multi_reduction <add>, %52, %cst_61 [0] : vector<16x64xf32> to vector<64xf32>
    %54 = vector.shape_cast %53 : vector<64xf32> to vector<1x64xf32>
    %cst_62 = arith.constant 1.600000e+01 : f32
    %55 = vector.broadcast %cst_62 : f32 to vector<1x64xf32>
    %56 = arith.divf %54, %55 : vector<1x64xf32>
    %c0_63 = arith.constant 0 : index
    %c0_64 = arith.constant 0 : index
    %57 = vector.load %arg5[%c0_63, %c0_64] : memref<64x32xf32, #tpu.memory_space<vmem>>, vector<64x32xf32>
    %cst_65 = arith.constant dense<0.000000e+00> : vector<1x32xf32>
    %58 = tpu.matmul %56, %57, %cst_65 {dimension_numbers = #tpu.dot_dimension_numbers<[1], [0], [0], [1], [0, 0, 1, 1], [], []>} : vector<1x64xf32>, vector<64x32xf32>, vector<1x32xf32> -> vector<1x32xf32>
    %c0_66 = arith.constant 0 : index
    %c0_67 = arith.constant 0 : index
    %59 = vector.load %arg6[%c0_66, %c0_67] : memref<1x32xf32, #tpu.memory_space<vmem>>, vector<1x32xf32>
    %60 = arith.addf %58, %59 : vector<1x32xf32>
    %cst_68 = arith.constant 0.000000e+00 : f32
    %61 = vector.broadcast %cst_68 : f32 to vector<1x32xf32>
    %62 = arith.maximumf %60, %61 : vector<1x32xf32>
    %c0_69 = arith.constant 0 : index
    %c0_70 = arith.constant 0 : index
    %63 = vector.load %arg7[%c0_69, %c0_70] : memref<32x2xf32, #tpu.memory_space<vmem>>, vector<32x2xf32>
    %cst_71 = arith.constant dense<0.000000e+00> : vector<1x2xf32>
    %64 = tpu.matmul %62, %63, %cst_71 {dimension_numbers = #tpu.dot_dimension_numbers<[1], [0], [0], [1], [0, 0, 1, 1], [], []>} : vector<1x32xf32>, vector<32x2xf32>, vector<1x2xf32> -> vector<1x2xf32>
    %c0_72 = arith.constant 0 : index
    %c0_73 = arith.constant 0 : index
    %65 = vector.load %arg8[%c0_72, %c0_73] : memref<1x2xf32, #tpu.memory_space<vmem>>, vector<1x2xf32>
    %66 = arith.addf %64, %65 : vector<1x2xf32>
    %c0_74 = arith.constant 0 : index
    %c0_75 = arith.constant 0 : index
    %67 = vector.load %arg9[%c0_74, %c0_75] : memref<2x2xf32, #tpu.memory_space<vmem>>, vector<1x2xf32>
    tpu.vector_store %arg9[%c0_74, %c0_75], %66 {strides = array<i32>} : memref<2x2xf32, #tpu.memory_space<vmem>>, vector<1x2xf32>,
    %c1_76 = arith.constant 1 : index
    %c0_77 = arith.constant 0 : index
    %c0_78 = arith.constant 0 : index
    %68 = vector.load %arg10[%c1_76, %c0_77, %c0_78] : memref<2x18x8xf32, #tpu.memory_space<vmem>>, vector<1x16x8xf32>
    %69 = vector.shape_cast %68 : vector<1x16x8xf32> to vector<16x8xf32>
    %c0_79 = arith.constant 0 : index
    %c0_80 = arith.constant 0 : index
    %c0_81 = arith.constant 0 : index
    %70 = vector.load %arg1[%c0_79, %c0_80, %c0_81] : memref<3x8x32xf32, #tpu.memory_space<vmem>>, vector<1x8x32xf32>
    %71 = vector.shape_cast %70 : vector<1x8x32xf32> to vector<8x32xf32>
    %cst_82 = arith.constant dense<0.000000e+00> : vector<16x32xf32>
    %72 = tpu.matmul %69, %71, %cst_82 {dimension_numbers = #tpu.dot_dimension_numbers<[1], [0], [0], [1], [0, 0, 1, 1], [], []>} : vector<16x8xf32>, vector<8x32xf32>, vector<16x32xf32> -> vector<16x32xf32>
    %c1_83 = arith.constant 1 : index
    %c1_84 = arith.constant 1 : index
    %c0_85 = arith.constant 0 : index
    %73 = vector.load %arg10[%c1_83, %c1_84, %c0_85] : memref<2x18x8xf32, #tpu.memory_space<vmem>>, vector<1x16x8xf32>
    %74 = vector.shape_cast %73 : vector<1x16x8xf32> to vector<16x8xf32>
    %c1_86 = arith.constant 1 : index
    %c0_87 = arith.constant 0 : index
    %c0_88 = arith.constant 0 : index
    %75 = vector.load %arg1[%c1_86, %c0_87, %c0_88] : memref<3x8x32xf32, #tpu.memory_space<vmem>>, vector<1x8x32xf32>
    %76 = vector.shape_cast %75 : vector<1x8x32xf32> to vector<8x32xf32>
    %cst_89 = arith.constant dense<0.000000e+00> : vector<16x32xf32>
    %77 = tpu.matmul %74, %76, %cst_89 {dimension_numbers = #tpu.dot_dimension_numbers<[1], [0], [0], [1], [0, 0, 1, 1], [], []>} : vector<16x8xf32>, vector<8x32xf32>, vector<16x32xf32> -> vector<16x32xf32>
    %78 = arith.addf %72, %77 : vector<16x32xf32>
    %c1_90 = arith.constant 1 : index
    %c2_91 = arith.constant 2 : index
    %c0_92 = arith.constant 0 : index
    %79 = vector.load %arg10[%c1_90, %c2_91, %c0_92] : memref<2x18x8xf32, #tpu.memory_space<vmem>>, vector<1x16x8xf32>
    %80 = vector.shape_cast %79 : vector<1x16x8xf32> to vector<16x8xf32>
    %c2_93 = arith.constant 2 : index
    %c0_94 = arith.constant 0 : index
    %c0_95 = arith.constant 0 : index
    %81 = vector.load %arg1[%c2_93, %c0_94, %c0_95] : memref<3x8x32xf32, #tpu.memory_space<vmem>>, vector<1x8x32xf32>
    %82 = vector.shape_cast %81 : vector<1x8x32xf32> to vector<8x32xf32>
    %cst_96 = arith.constant dense<0.000000e+00> : vector<16x32xf32>
    %83 = tpu.matmul %80, %82, %cst_96 {dimension_numbers = #tpu.dot_dimension_numbers<[1], [0], [0], [1], [0, 0, 1, 1], [], []>} : vector<16x8xf32>, vector<8x32xf32>, vector<16x32xf32> -> vector<16x32xf32>
    %84 = arith.addf %78, %83 : vector<16x32xf32>
    %c0_97 = arith.constant 0 : index
    %c0_98 = arith.constant 0 : index
    %85 = vector.load %arg2[%c0_97, %c0_98] : memref<1x32xf32, #tpu.memory_space<vmem>>, vector<1x32xf32>
    %86 = vector.broadcast %85 : vector<1x32xf32> to vector<16x32xf32>
    %87 = arith.addf %84, %86 : vector<16x32xf32>
    %cst_99 = arith.constant 0.000000e+00 : f32
    %88 = vector.broadcast %cst_99 : f32 to vector<16x32xf32>
    %89 = arith.maximumf %87, %88 : vector<16x32xf32>
    %c1_100 = arith.constant 1 : index
    %c1_101 = arith.constant 1 : index
    %c0_102 = arith.constant 0 : index
    %90 = vector.load %arg11[%c1_100, %c1_101, %c0_102] : memref<2x18x32xf32, #tpu.memory_space<vmem>>, vector<1x16x32xf32>
    %91 = vector.shape_cast %90 : vector<1x16x32xf32> to vector<16x32xf32>
    %92 = vector.shape_cast %89 : vector<16x32xf32> to vector<1x16x32xf32>
    tpu.vector_store %arg11[%c1_100, %c1_101, %c0_102], %92 {strides = array<i32>} : memref<2x18x32xf32, #tpu.memory_space<vmem>>, vector<1x16x32xf32>,
    %c1_103 = arith.constant 1 : index
    %c0_104 = arith.constant 0 : index
    %c0_105 = arith.constant 0 : index
    %93 = vector.load %arg11[%c1_103, %c0_104, %c0_105] : memref<2x18x32xf32, #tpu.memory_space<vmem>>, vector<1x16x32xf32>
    %94 = vector.shape_cast %93 : vector<1x16x32xf32> to vector<16x32xf32>
    %c0_106 = arith.constant 0 : index
    %c0_107 = arith.constant 0 : index
    %c0_108 = arith.constant 0 : index
    %95 = vector.load %arg3[%c0_106, %c0_107, %c0_108] : memref<3x32x64xf32, #tpu.memory_space<vmem>>, vector<1x32x64xf32>
    %96 = vector.shape_cast %95 : vector<1x32x64xf32> to vector<32x64xf32>
    %cst_109 = arith.constant dense<0.000000e+00> : vector<16x64xf32>
    %97 = tpu.matmul %94, %96, %cst_109 {dimension_numbers = #tpu.dot_dimension_numbers<[1], [0], [0], [1], [0, 0, 1, 1], [], []>} : vector<16x32xf32>, vector<32x64xf32>, vector<16x64xf32> -> vector<16x64xf32>
    %c1_110 = arith.constant 1 : index
    %c1_111 = arith.constant 1 : index
    %c0_112 = arith.constant 0 : index
    %98 = vector.load %arg11[%c1_110, %c1_111, %c0_112] : memref<2x18x32xf32, #tpu.memory_space<vmem>>, vector<1x16x32xf32>
    %99 = vector.shape_cast %98 : vector<1x16x32xf32> to vector<16x32xf32>
    %c1_113 = arith.constant 1 : index
    %c0_114 = arith.constant 0 : index
    %c0_115 = arith.constant 0 : index
    %100 = vector.load %arg3[%c1_113, %c0_114, %c0_115] : memref<3x32x64xf32, #tpu.memory_space<vmem>>, vector<1x32x64xf32>
    %101 = vector.shape_cast %100 : vector<1x32x64xf32> to vector<32x64xf32>
    %cst_116 = arith.constant dense<0.000000e+00> : vector<16x64xf32>
    %102 = tpu.matmul %99, %101, %cst_116 {dimension_numbers = #tpu.dot_dimension_numbers<[1], [0], [0], [1], [0, 0, 1, 1], [], []>} : vector<16x32xf32>, vector<32x64xf32>, vector<16x64xf32> -> vector<16x64xf32>
    %103 = arith.addf %97, %102 : vector<16x64xf32>
    %c1_117 = arith.constant 1 : index
    %c2_118 = arith.constant 2 : index
    %c0_119 = arith.constant 0 : index
    %104 = vector.load %arg11[%c1_117, %c2_118, %c0_119] : memref<2x18x32xf32, #tpu.memory_space<vmem>>, vector<1x16x32xf32>
    %105 = vector.shape_cast %104 : vector<1x16x32xf32> to vector<16x32xf32>
    %c2_120 = arith.constant 2 : index
    %c0_121 = arith.constant 0 : index
    %c0_122 = arith.constant 0 : index
    %106 = vector.load %arg3[%c2_120, %c0_121, %c0_122] : memref<3x32x64xf32, #tpu.memory_space<vmem>>, vector<1x32x64xf32>
    %107 = vector.shape_cast %106 : vector<1x32x64xf32> to vector<32x64xf32>
    %cst_123 = arith.constant dense<0.000000e+00> : vector<16x64xf32>
    %108 = tpu.matmul %105, %107, %cst_123 {dimension_numbers = #tpu.dot_dimension_numbers<[1], [0], [0], [1], [0, 0, 1, 1], [], []>} : vector<16x32xf32>, vector<32x64xf32>, vector<16x64xf32> -> vector<16x64xf32>
    %109 = arith.addf %103, %108 : vector<16x64xf32>
    %c0_124 = arith.constant 0 : index
    %c0_125 = arith.constant 0 : index
    %110 = vector.load %arg4[%c0_124, %c0_125] : memref<1x64xf32, #tpu.memory_space<vmem>>, vector<1x64xf32>
    %111 = vector.broadcast %110 : vector<1x64xf32> to vector<16x64xf32>
    %112 = arith.addf %109, %111 : vector<16x64xf32>
    %cst_126 = arith.constant 0.000000e+00 : f32
    %113 = vector.broadcast %cst_126 : f32 to vector<16x64xf32>
    %114 = arith.maximumf %112, %113 : vector<16x64xf32>
    %cst_127 = arith.constant dense<0.000000e+00> : vector<64xf32>
    %115 = vector.multi_reduction <add>, %114, %cst_127 [0] : vector<16x64xf32> to vector<64xf32>
    %116 = vector.shape_cast %115 : vector<64xf32> to vector<1x64xf32>
    %cst_128 = arith.constant 1.600000e+01 : f32
    %117 = vector.broadcast %cst_128 : f32 to vector<1x64xf32>
    %118 = arith.divf %116, %117 : vector<1x64xf32>
    %c0_129 = arith.constant 0 : index
    %c0_130 = arith.constant 0 : index
    %119 = vector.load %arg5[%c0_129, %c0_130] : memref<64x32xf32, #tpu.memory_space<vmem>>, vector<64x32xf32>
    %cst_131 = arith.constant dense<0.000000e+00> : vector<1x32xf32>
    %120 = tpu.matmul %118, %119, %cst_131 {dimension_numbers = #tpu.dot_dimension_numbers<[1], [0], [0], [1], [0, 0, 1, 1], [], []>} : vector<1x64xf32>, vector<64x32xf32>, vector<1x32xf32> -> vector<1x32xf32>
    %c0_132 = arith.constant 0 : index
    %c0_133 = arith.constant 0 : index
    %121 = vector.load %arg6[%c0_132, %c0_133] : memref<1x32xf32, #tpu.memory_space<vmem>>, vector<1x32xf32>
    %122 = arith.addf %120, %121 : vector<1x32xf32>
    %cst_134 = arith.constant 0.000000e+00 : f32
    %123 = vector.broadcast %cst_134 : f32 to vector<1x32xf32>
    %124 = arith.maximumf %122, %123 : vector<1x32xf32>
    %c0_135 = arith.constant 0 : index
    %c0_136 = arith.constant 0 : index
    %125 = vector.load %arg7[%c0_135, %c0_136] : memref<32x2xf32, #tpu.memory_space<vmem>>, vector<32x2xf32>
    %cst_137 = arith.constant dense<0.000000e+00> : vector<1x2xf32>
    %126 = tpu.matmul %124, %125, %cst_137 {dimension_numbers = #tpu.dot_dimension_numbers<[1], [0], [0], [1], [0, 0, 1, 1], [], []>} : vector<1x32xf32>, vector<32x2xf32>, vector<1x2xf32> -> vector<1x2xf32>
    %c0_138 = arith.constant 0 : index
    %c0_139 = arith.constant 0 : index
    %127 = vector.load %arg8[%c0_138, %c0_139] : memref<1x2xf32, #tpu.memory_space<vmem>>, vector<1x2xf32>
    %128 = arith.addf %126, %127 : vector<1x2xf32>
    %c1_140 = arith.constant 1 : index
    %c0_141 = arith.constant 0 : index
    %129 = vector.load %arg9[%c1_140, %c0_141] : memref<2x2xf32, #tpu.memory_space<vmem>>, vector<1x2xf32>
    tpu.vector_store %arg9[%c1_140, %c0_141], %128 {strides = array<i32>} : memref<2x2xf32, #tpu.memory_space<vmem>>, vector<1x2xf32>,
    return
  }
}

</mosaic_0001>

<bundles_post_ra>
// kernel: timeseries_cnn_forward.1
= control target key start
LH: loop header
LB: loop body
LE: loop exit
PB: predicated region body
PF: predicated region fallthrough
CT: control target
= control target key end

     0   :  { %vm33_vm0 = vcmask 64512   ;;  %vm36_vm1 = vcmask 58368   ;;  %v761_v2 = vmov 0.0   ;;  %s1030_s0 = inlined_call_operand.vmem [shape: f32[2,16,8], index: 0, kind: input, shape index: {}]   ;;  %s1031_s1 = inlined_call_operand.vmem [shape: f32[3,8,32], index: 1, kind: input, shape index: {}]   ;;  %s1032_s2 = inlined_call_operand.vmem [shape: f32[1,32], index: 2, kind: input, shape index: {}]   ;;  %s1033_s3 = inlined_call_operand.vmem [shape: f32[3,32,64], index: 3, kind: input, shape index: {}]   ;;  %s1034_s4 = inlined_call_operand.vmem [shape: f32[1,64], index: 4, kind: input, shape index: {}]   ;;  %s1035_s5 = inlined_call_operand.vmem [shape: f32[64,32], index: 5, kind: input, shape index: {}]   ;;  %s1036_s6 = inlined_call_operand.vmem [shape: f32[1,32], index: 6, kind: input, shape index: {}]   ;;  %s1037_s7 = inlined_call_operand.vmem [shape: f32[32,2], index: 7, kind: input, shape index: {}]   ;;  %s1038_s8 = inlined_call_operand.vmem [shape: f32[1,2], index: 8, kind: input, shape index: {}]   ;;  %s1039_s9 = inlined_call_operand.hbm [shape: f32[2,2], index: 9, kind: output, shape index: {}]  }
   0x1   :  { %v683_v0 = vld [vmem:[%s1031_s1 + $0x10] sm:$0xff]  ;;  %v49_v1 = vld [vmem:[%s1030_s0] sm:$0xff]  ;;  %34 = vst.msk [vmem:[#allocation2] sm:$0xff] %vm33_vm0, %v761_v2  ;;  %v824_v3 = vld [vmem:[%s1031_s1 + $0x8] sm:$0xff] }
   0x2   :  { %147 = vmatpush.msra.mxu2 %v683_v0  ;;  %v829_v4 = vld [vmem:[%s1031_s1] sm:$0xff]  ;;  %35 = vst.msk [vmem:[#allocation2 + $0x8] sm:$0xff] %vm33_vm0, %v761_v2  ;;  %v50_v5 = vld [vmem:[%s1030_s0 + $0x8] sm:$0xff]  ;;  %85 = vmatpush.msra.mxu0 %v824_v3 }
   0x3   :  { %114 = vmatpush.msra.mxu1 %v829_v4  ;;  %37 = vst.msk [vmem:[#allocation2 + $0x10] sm:$0x3] %vm36_vm1, %v761_v2 }
   0x4   :  { %14 = vsyncpa [#allocation5], 0  ;;  %53 = vst.msk [vmem:[#allocation2 + $0x1] sm:$0xff] %vm33_vm0, %v49_v1  ;;  %vm41_vm2 = vcmask 261120   ;;  %v856_v12 = vld [vmem:[%s1033_s3 + $0x18] sm:$0xff]  ;;  %vm44_vm3 = vcmask 254976  }
   0x5   :  { %54 = vst.msk [vmem:[#allocation2 + $0x9] sm:$0xff] %vm33_vm0, %v50_v5  ;;  %v861_v13 = vld [vmem:[%s1033_s3 + $0x58] sm:$0xff]  ;;  %227 = vmatpush.msrb.mxu0 %v856_v12  ;;  %v871_v15 = vld [vmem:[%s1033_s3 + $0x10] sm:$0xff]  ;;  %v687_v17 = vld [vmem:[%s1033_s3 + $0x28] sm:$0xff]  ;;  %v762_v59 = vmov 16.0   ;;  %vm284_vm4 = vcmask 523264  }
   0x6   :  { %38 = vst.msk [vmem:[#allocation2 + $0x18] sm:$0xff] %vm33_vm0, %v761_v2  ;;  %v689_v14 = vld [vmem:[%s1033_s3 + $0x38] sm:$0xff]  ;;  %263 = vmatpush.msrb.mxu1 %v861_v13  ;;  %v688_v16 = vld [vmem:[%s1033_s3 + $0x30] sm:$0xff]  ;;  %v883_v18 = vld [vmem:[%s1033_s3 + $0x8] sm:$0xff]  ;;  %733 = vrcp.f32 %v762_v59  ;;  %vm363_vm6 = vcmask 8192   ;;  %s763_s14 = smov [#allocation4]  }
   0x7   :  { %39 = vst.msk [vmem:[#allocation2 + $0x20] sm:$0xff] %vm33_vm0, %v761_v2  ;;  %198 = vmatpush.msra.mxu3 %v689_v14  ;;  %228 = vmatpush.msrb.mxu0 %v871_v15  ;;  %v686_v19 = vld [vmem:[%s1033_s3 + $0x20] sm:$0xff]  ;;  %v898_v21 = vld [vmem:[%s1033_s3 + $0x50] sm:$0xff]  ;;  %v903_v22 = vld [vmem:[%s1033_s3 + $0x48] sm:$0xff]  ;;  %s667_s15 = sshll.u32 %s763_s14, 4  ;;  %s669_s18 = sshll.u32 %s1039_s9, 4  ;;  %s668_s15 = int_to_ptr.vmem [resolvable:$true] %s667_s15  ;;  %s670_s18 = int_to_ptr.hbm [resolvable:$true] %s669_s18 }
   0x8   :  { %40 = vst.msk [vmem:[#allocation2 + $0x28] sm:$0x3] %vm36_vm1, %v761_v2  ;;  %v892_v20 = vld [vmem:[%s1033_s3] sm:$0xff]  ;;  %264 = vmatpush.msrb.mxu1 %v898_v21  ;;  %v309_v45 = vld [vmem:[%s1035_s5 + $0x38] sm:$0xff]  ;;  %v308_v46 = vld [vmem:[%s1035_s5 + $0x30] sm:$0xff] }
   0x9   :  { %42 = vst.msk [vmem:[#allocation3] sm:$0xff] %vm41_vm2, %v761_v2  ;;  %199 = vmatpush.msra.mxu3 %v688_v16  ;;  %229 = vmatpush.msrb.mxu0 %v883_v18  ;;  %v909_v23 = vld [vmem:[%s1033_s3 + $0x40] sm:$0xff]  ;;  %v307_v47 = vld [vmem:[%s1035_s5 + $0x28] sm:$0xff]  ;;  %v305_v49 = vld [vmem:[%s1035_s5 + $0x18] sm:$0xff] }
   0xa   :  { %43 = vst.msk [vmem:[#allocation3 + $0x8] sm:$0xff] %vm41_vm2, %v761_v2  ;;  %265 = vmatpush.msrb.mxu1 %v903_v22  ;;  %v729_v27 = vld [vmem:[%s1032_s2] ss:$0 sm:$0xff]  ;;  %322 = vmatpush.msrb.mxu2 %v309_v45  ;;  %v304_v50 = vld [vmem:[%s1035_s5 + $0x10] sm:$0xff]  ;;  %v303_v51 = vld [vmem:[%s1035_s5 + $0x8] sm:$0xff] }
   0xb   :  { %v60_v6 = vld [vmem:[#allocation2 + $0x1] sm:$0xff]  ;;  %46 = vst.msk [vmem:[#allocation3 + $0x18] sm:$0xff] %vm41_vm2, %v761_v2  ;;  %200 = vmatpush.msra.mxu3 %v687_v17  ;;  %230 = vmatpush.msrb.mxu0 %v892_v20  ;;  %v338_v57 = vld [vmem:[%s1037_s7 + $0x18] sm:$0xff]  ;;  %v337_v58 = vld [vmem:[%s1037_s7 + $0x10] sm:$0xff] }
   0xc   :  { %v57_v7 = vld [vmem:[#allocation2] sm:$0xff]  ;;  %679 = vmatmul.msk.f32.vlgmr.msra.gmra.mxu0 %vm33_vm0, %v60_v6  ;;  %v61_v9 = vld [vmem:[#allocation2 + $0x9] sm:$0xff]  ;;  %47 = vst.msk [vmem:[#allocation3 + $0x20] sm:$0xff] %vm41_vm2, %v761_v2  ;;  %266 = vmatpush.msrb.mxu1 %v909_v23 }
   0xd   :  { %v122_v8 = vld [vmem:[#allocation2 + $0x2] sm:$0xff]  ;;  %681 = vmatmul.msk.f32.vlgmr.msra.gmra.mxu1 %vm33_vm0, %v57_v7  ;;  %v123_v11 = vld [vmem:[#allocation2 + $0xa] sm:$0xff]  ;;  %45 = vst.msk [vmem:[#allocation3 + $0x10] sm:$0x3] %vm44_vm3, %v761_v2  ;;  %201 = vmatpush.msra.mxu3 %v686_v19  ;;  %v730_v62 = vld [vmem:[%s1034_s4] ss:$0 sm:$0xff] }
   0xe   :  { %684 = vmatmul.msk.f32.vlgmr.msra.gmra.mxu2 %vm33_vm0, %v122_v8  ;;  %v58_v10 = vld [vmem:[#allocation2 + $0x8] sm:$0xff]  ;;  %48 = vst.msk [vmem:[#allocation3 + $0x28] sm:$0x3] %vm44_vm3, %v761_v2  ;;  %454 = vmatpush.msra.mxu0 %v683_v0  ;;  %v306_v48 = vld [vmem:[%s1035_s5 + $0x20] sm:$0xff] }
   0xf   :  { %505 = vmatpush.msra.mxu1 %v689_v14  ;;  %323 = vmatpush.msrb.mxu2 %v308_v46  ;;  %v302_v53 = vld [vmem:[%s1035_s5] sm:$0xff]  ;;  %v336_v60 = vld [vmem:[%s1037_s7 + $0x8] sm:$0xff] }
  0x10   :  { %355 = vmatpush.msrb.mxu3 %v338_v57 }
  0x11   :  { %506 = vmatpush.msra.mxu1 %v688_v16  ;;  %324 = vmatpush.msrb.mxu2 %v307_v47 }
  0x12   :  { %356 = vmatpush.msrb.mxu3 %v337_v58 }
  0x13   :  { %507 = vmatpush.msra.mxu1 %v687_v17  ;;  %325 = vmatpush.msrb.mxu2 %v306_v48 }
  0x14   :  { %680 = vmatmul.msk.f32.gmra.mxu0 %vm33_vm0, %v61_v9  ;;  %357 = vmatpush.msrb.mxu3 %v336_v60 }
  0x15   :  { %682 = vmatmul.msk.f32.gmra.mxu1 %vm33_vm0, %v58_v10  ;;  %326 = vmatpush.msrb.mxu2 %v305_v49 }
  0x16   :  { %685 = vmatmul.msk.f32.gmra.mxu2 %vm33_vm0, %v123_v11  ;;  %508 = vmatpush.msra.mxu1 %v686_v19 }
  0x17   :  { %327 = vmatpush.msrb.mxu2 %v304_v50 }
  0x19   :  { %328 = vmatpush.msrb.mxu2 %v303_v51 }
  0x1b   :  { %329 = vmatpush.msrb.mxu2 %v302_v53 }
  0x1d   :  { %393 = vmatpush.msra.mxu2 %v824_v3  ;;  %v734_v3 = vpop.eup %733 }
  0x1e   :  { %v295_v9 = vmul.f32 16.0, %v734_v3  ;;  %vm299_vm5 = vweird.f32 %v734_v3 }
  0x20   :  { %v296_v16 = vsub.f32 1.0, %v295_v9 }
  0x89   :  { %v87_v24 = vpop.f32.mrf.mxu0 }
  0x8a   :  { %v116_v25 = vpop.f32.mrf.mxu1 }
  0x8b   :  { %v117_v26 = vadd.f32 %v116_v25, %v87_v24  ;;  %v297_v24 = vmul.f32 %v734_v3, %v296_v16 }
  0x91   :  { %v149_v28 = vpop.f32.mrf.mxu2  ;;  %v90_v30 = vpop.f32.mrf.mxu0 }
  0x92   :  { %v155_v29 = vadd.f32 %v149_v28, %v117_v26  ;;  %v119_v31 = vpop.f32.mrf.mxu1 }
  0x93   :  { %v120_v34 = vadd.f32 %v119_v31, %v90_v30 }
  0x94   :  { %v161_v32 = vadd.f32 %v729_v27, %v155_v29 }
  0x96   :  { %v163_v33 = vmax.f32 %v161_v32, 0.0 }
  0x98   :  { %165 = vst.msk [vmem:[#allocation3 + $0x1] sm:$0xff] %vm41_vm2, %v163_v33  ;;  %v335_v33 = vld [vmem:[%s1037_s7] sm:$0xff] }
  0x99   :  { %v152_v35 = vpop.f32.mrf.mxu2  ;;  %358 = vmatpush.msrb.mxu3 %v335_v33 }
  0x9a   :  { %v156_v36 = vadd.f32 %v152_v35, %v120_v34  ;;  %v51_v34 = vld [vmem:[%s1030_s0 + $0x10] sm:$0xff] }
  0x9b   :  { %55 = vst.msk [vmem:[#allocation2 + $0x19] sm:$0xff] %vm33_vm0, %v51_v34 }
  0x9c   :  { %v162_v37 = vadd.f32 %v729_v27, %v156_v36  ;;  %v298_v27 = vadd.f32 %v734_v3, %v297_v24 }
  0x9e   :  { %v164_v38 = vmax.f32 %v162_v37, 0.0  ;;  %v963_v30 = vsel %vm299_vm5, %v734_v3, %v298_v27 }
  0x9f   :  { %v173_v39 = vld [vmem:[#allocation3 + $0x1] sm:$0xff] }
  0xa0   :  { %v167_v40 = vld [vmem:[#allocation3] sm:$0xff]  ;;  %166 = vst.msk [vmem:[#allocation3 + $0x9] sm:$0xff] %vm41_vm2, %v164_v38  ;;  %690 = vmatmul.msk.f32.vlgmr.msra.gmra.mxu3 %vm41_vm2, %v173_v39 }
  0xa1   :  { %692 = vmatmul.msk.f32.vlgmr.msrb.gmra.mxu0 %vm41_vm2, %v167_v40  ;;  %422 = vmatpush.msra.mxu3 %v829_v4  ;;  %v310_v4 = vld [vmem:[%s1036_s6] sm:$0x1] }
  0xa2   :  { %620 = vmatpush.msrb.mxu0 %v309_v45  ;;  %v366_v39 = vld [vmem:[#allocation2 + $0x18] sm:$0xff] }
  0xa4   :  { %621 = vmatpush.msrb.mxu0 %v308_v46 }
  0xa6   :  { %622 = vmatpush.msrb.mxu0 %v307_v47 }
  0xa7   :  { %v174_v41 = vld [vmem:[#allocation3 + $0x9] sm:$0xff] }
  0xa8   :  { %v168_v42 = vld [vmem:[#allocation3 + $0x8] sm:$0xff]  ;;  %691 = vmatmul.msk.f32.gmra.mxu3 %vm41_vm2, %v174_v41  ;;  %623 = vmatpush.msrb.mxu0 %v306_v48  ;;  %v339_v41 = vld [vmem:[%s1038_s8] sm:$0x1] }
  0xa9   :  { %v238_v43 = vld [vmem:[#allocation3 + $0x2] sm:$0xff]  ;;  %693 = vmatmul.msk.f32.gmra.mxu0 %vm41_vm2, %v168_v42  ;;  %v239_v44 = vld [vmem:[#allocation3 + $0xa] sm:$0xff] }
  0xaa   :  { %698 = vmatmul.msk.f32.vlgmr.msrb.gmra.mxu1 %vm41_vm2, %v238_v43  ;;  %624 = vmatpush.msrb.mxu0 %v305_v49 }
  0xab   :  { %653 = vmatpush.msrb.mxu1 %v338_v57 }
  0xac   :  { %625 = vmatpush.msrb.mxu0 %v304_v50 }
  0xad   :  { %654 = vmatpush.msrb.mxu1 %v337_v58 }
  0xae   :  { %626 = vmatpush.msrb.mxu0 %v303_v51 }
  0xaf   :  { %655 = vmatpush.msrb.mxu1 %v336_v60 }
  0xb0   :  { %627 = vmatpush.msrb.mxu0 %v302_v53 }
  0xb1   :  { %656 = vmatpush.msrb.mxu1 %v335_v33 }
  0xb2   :  { %699 = vmatmul.msk.f32.gmra.mxu1 %vm41_vm2, %v239_v44 }
 0x11e   :  { %v232_v52 = vpop.f32.mrf.mxu0 }
 0x123   :  { %v203_v54 = vpop.f32.mrf.mxu3 }
 0x124   :  { %v233_v55 = vadd.f32 %v232_v52, %v203_v54 }
 0x126   :  { %v235_v63 = vpop.f32.mrf.mxu0 }
 0x127   :  { %v268_v56 = vpop.f32.mrf.mxu1 }
 0x128   :  { %v274_v61 = vadd.f32 %v268_v56, %v233_v55 }
 0x12a   :  { %v280_v2 = vadd.f32 %v730_v62, %v274_v61 }
 0x12b   :  { %v206_v0 = vpop.f32.mrf.mxu3 }
 0x12c   :  { %v236_v1 = vadd.f32 %v235_v63, %v206_v0  ;;  %v282_v7 = vmax.f32 %v280_v2, 0.0  ;;  %v732_v2 = vld [vmem:[%s1034_s4] ss:$0 sm:$0xff] }
 0x12e   :  { %v285_v11 = vsel %vm284_vm4, %v282_v7, 0.0 }
 0x12f   :  { %v271_v5 = vpop.f32.mrf.mxu1 }
 0x130   :  { %v275_v6 = vadd.f32 %v271_v5, %v236_v1 }
 0x132   :  { %v281_v8 = vadd.f32 %v730_v62, %v275_v6 }
 0x134   :  { %v283_v10 = vmax.f32 %v281_v8, 0.0 }
 0x136   :  { %v286_v14 = vsel %vm284_vm4, %v283_v10, 0.0 }
 0x137   :  { %v287_v17 = vadd.f32 %v286_v14, %v285_v11 }
 0x139   :  { %v288_v19 = vrot.slane %v287_v17, 4 }
 0x13b   :  { %v289_v25 = vadd.f32 %v288_v19, %v287_v17 }
 0x13d   :  { %v290_v26 = vrot.slane %v289_v25, 2 }
 0x13f   :  { %v291_v28 = vadd.f32 %v290_v26, %v289_v25 }
 0x141   :  { %v292_v29 = vrot.slane %v291_v28, 1 }
 0x143   :  { %v293_v31 = vadd.f32 %v292_v29, %v291_v28 }
 0x145   :  { %v301_v32 = vmul.f32 %v963_v30, %v293_v31 }
 0x147   :  { %700 = vmatmul.msk.f32.vlgmr.msrb.gmra.mxu2 %vm284_vm4, %v301_v32  ;;  %v608_v32 = vld [vmem:[%s1036_s6] sm:$0x1] }
 0x148   :  { %534 = vmatpush.msrb.mxu2 %v856_v12  ;;  %v369_v12 = vld [vmem:[#allocation2 + $0x19] sm:$0xff] }
 0x14a   :  { %535 = vmatpush.msrb.mxu2 %v871_v15  ;;  %v52_v15 = vld [vmem:[%s1030_s0 + $0x18] sm:$0xff] }
 0x14b   :  { %56 = vst.msk [vmem:[#allocation2 + $0x21] sm:$0xff] %vm33_vm0, %v52_v15  ;;  %v637_v15 = vld [vmem:[%s1038_s8] sm:$0x1] }
 0x14c   :  { %536 = vmatpush.msrb.mxu2 %v883_v18 }
 0x14e   :  { %537 = vmatpush.msrb.mxu2 %v892_v20 }
 0x14f   :  { %703 = vmatmul.msk.f32.vlgmr.msra.gmra.mxu2 %vm33_vm0, %v369_v12 }
 0x152   :  { %v370_v18 = vld [vmem:[#allocation2 + $0x21] sm:$0xff] }
 0x153   :  { %v430_v20 = vld [vmem:[#allocation2 + $0x1a] sm:$0xff]  ;;  %v431_v35 = vld [vmem:[#allocation2 + $0x22] sm:$0xff] }
 0x154   :  { %708 = vmatmul.msk.f32.vlgmr.msra.gmra.mxu0 %vm33_vm0, %v430_v20  ;;  %v367_v40 = vld [vmem:[#allocation2 + $0x20] sm:$0xff] }
 0x157   :  { %704 = vmatmul.msk.f32.gmra.mxu2 %vm33_vm0, %v370_v18 }
 0x15c   :  { %709 = vmatmul.msk.f32.gmra.mxu0 %vm33_vm0, %v431_v35 }
 0x1ca   :  { %v331_v36 = vpop.f32.mrf.mxu2 }
 0x1cb   :  { %v332_v37 = vadd.f32 %v331_v36, %v310_v4 }
 0x1cd   :  { %v334_v38 = vmax.f32 %v332_v37, 0.0 }
 0x1cf   :  { %701 = vmatmul.msk.f32.vlgmr.msrb.gmra.mxu3 %vm41_vm2, %v334_v38 }
 0x1d0   :  { %569 = vmatpush.msrb.mxu3 %v861_v13 }
 0x1d2   :  { %570 = vmatpush.msrb.mxu3 %v898_v21  ;;  %v395_v13 = vpop.f32.mrf.mxu2  ;;  %v456_v21 = vpop.f32.mrf.mxu0 }
 0x1d4   :  { %571 = vmatpush.msrb.mxu3 %v903_v22 }
 0x1d6   :  { %572 = vmatpush.msrb.mxu3 %v909_v23  ;;  %v731_v23 = vld [vmem:[%s1032_s2] ss:$0 sm:$0xff] }
 0x1d7   :  { %705 = vmatmul.msk.f32.vlgmr.msra.gmra.mxu3 %vm33_vm0, %v366_v39 }
 0x1da   :  { %v398_v47 = vpop.f32.mrf.mxu2  ;;  %v459_v50 = vpop.f32.mrf.mxu0 }
 0x1df   :  { %706 = vmatmul.msk.f32.gmra.mxu3 %vm33_vm0, %v367_v40 }
 0x252   :  { %v360_v42 = vpop.f32.mrf.mxu3 }
 0x253   :  { %v361_v43 = vadd.f32 %v360_v42, %v339_v41 }
 0x255   :  { %364 = vst.msk [vmem:[#allocation4] sm:$0x1] %vm363_vm6, %v361_v43 }
 0x25a   :  { %v424_v44 = vpop.f32.mrf.mxu3 }
 0x25b   :  { %v425_v22 = vadd.f32 %v424_v44, %v395_v13 }
 0x25d   :  { %v462_v45 = vadd.f32 %v456_v21, %v425_v22 }
 0x25f   :  { %v468_v46 = vadd.f32 %v731_v23, %v462_v45 }
 0x261   :  { %v470_v48 = vmax.f32 %v468_v46, 0.0 }
 0x262   :  { %v427_v49 = vpop.f32.mrf.mxu3 }
 0x263   :  { %473 = vst.msk [vmem:[#allocation3 + $0x19] sm:$0xff] %vm41_vm2, %v470_v48  ;;  %v428_v51 = vadd.f32 %v427_v49, %v398_v47 }
 0x265   :  { %v463_v52 = vadd.f32 %v459_v50, %v428_v51 }
 0x267   :  { %v469_v53 = vadd.f32 %v731_v23, %v463_v52 }
 0x269   :  { %v471_v54 = vmax.f32 %v469_v53, 0.0 }
 0x26a   :  { %v481_v55 = vld [vmem:[#allocation3 + $0x19] sm:$0xff] }
 0x26b   :  { %v475_v56 = vld [vmem:[#allocation3 + $0x18] sm:$0xff]  ;;  %474 = vst.msk [vmem:[#allocation3 + $0x21] sm:$0xff] %vm41_vm2, %v471_v54  ;;  %714 = vmatmul.msk.f32.vlgmr.msra.gmra.mxu1 %vm41_vm2, %v481_v55 }
 0x26c   :  { %716 = vmatmul.msk.f32.vlgmr.msrb.gmra.mxu2 %vm41_vm2, %v475_v56 }
 0x272   :  { %v482_v57 = vld [vmem:[#allocation3 + $0x21] sm:$0xff] }
 0x273   :  { %v476_v58 = vld [vmem:[#allocation3 + $0x20] sm:$0xff]  ;;  %715 = vmatmul.msk.f32.gmra.mxu1 %vm41_vm2, %v482_v57 }
 0x274   :  { %v545_v59 = vld [vmem:[#allocation3 + $0x1a] sm:$0xff]  ;;  %717 = vmatmul.msk.f32.gmra.mxu2 %vm41_vm2, %v476_v58  ;;  %v546_v60 = vld [vmem:[#allocation3 + $0x22] sm:$0xff] }
 0x275   :  { %722 = vmatmul.msk.f32.vlgmr.msrb.gmra.mxu3 %vm41_vm2, %v545_v59 }
 0x27d   :  { %723 = vmatmul.msk.f32.gmra.mxu3 %vm41_vm2, %v546_v60 }
 0x2e8   :  { %v510_v62 = vpop.f32.mrf.mxu1 }
 0x2ef   :  { %v539_v61 = vpop.f32.mrf.mxu2 }
 0x2f0   :  { %v540_v0 = vadd.f32 %v539_v61, %v510_v62  ;;  %v513_v5 = vpop.f32.mrf.mxu1 }
 0x2f7   :  { %v542_v3 = vpop.f32.mrf.mxu2 }
 0x2f8   :  { %v574_v63 = vpop.f32.mrf.mxu3  ;;  %v543_v6 = vadd.f32 %v542_v3, %v513_v5 }
 0x2f9   :  { %v580_v1 = vadd.f32 %v574_v63, %v540_v0 }
 0x2fb   :  { %v586_v7 = vadd.f32 %v732_v2, %v580_v1 }
 0x2fd   :  { %v588_v10 = vmax.f32 %v586_v7, 0.0 }
 0x2ff   :  { %v590_v16 = vsel %vm284_vm4, %v588_v10, 0.0 }
 0x300   :  { %v577_v8 = vpop.f32.mrf.mxu3 }
 0x301   :  { %v581_v9 = vadd.f32 %v577_v8, %v543_v6 }
 0x303   :  { %v587_v11 = vadd.f32 %v732_v2, %v581_v9 }
 0x305   :  { %v589_v14 = vmax.f32 %v587_v11, 0.0 }
 0x307   :  { %v591_v17 = vsel %vm284_vm4, %v589_v14, 0.0 }
 0x308   :  { %v592_v19 = vadd.f32 %v591_v17, %v590_v16 }
 0x30a   :  { %v593_v24 = vrot.slane %v592_v19, 4 }
 0x30c   :  { %v594_v25 = vadd.f32 %v593_v24, %v592_v19 }
 0x30e   :  { %v595_v26 = vrot.slane %v594_v25, 2 }
 0x310   :  { %v596_v27 = vadd.f32 %v595_v26, %v594_v25 }
 0x312   :  { %v597_v28 = vrot.slane %v596_v27, 1 }
 0x314   :  { %v598_v29 = vadd.f32 %v597_v28, %v596_v27 }
 0x316   :  { %v599_v31 = vmul.f32 %v598_v29, %v963_v30 }
 0x318   :  { %724 = vmatmul.msk.f32.vlgmr.msrb.gmra.mxu0 %vm284_vm4, %v599_v31 }
 0x395   :  { %v629_v33 = vpop.f32.mrf.mxu0 }
 0x396   :  { %v630_v34 = vadd.f32 %v629_v33, %v608_v32 }
 0x398   :  { %v632_v12 = vmax.f32 %v630_v34, 0.0 }
 0x39a   :  { %725 = vmatmul.msk.f32.vlgmr.msrb.gmra.mxu1 %vm41_vm2, %v632_v12 }
 0x417   :  { %v658_v30 = vpop.f32.mrf.mxu1 }
 0x418   :  { %v659_v18 = vadd.f32 %v658_v30, %v637_v15 }
 0x41a   :  { %661 = vst.msk [vmem:[#allocation4 + $0x1] sm:$0x1] %vm363_vm6, %v659_v18 }
 0x41b   :  { %672 = dma.vmem_to_hbm [thread:$0]  %s668_s15, 32, %s670_s18, [#allocation5]  }
 0x41c   :  { %759 = dma.done.wait [#allocation5], 32  }
 0x41d   :  { %760 = vsyncadd [#allocation5], 4294967264 }
 0x41e   :  { %677 = vsyncpa [#allocation5], 1 }

</bundles_post_ra>
